<compile_context>
chip_gen: v5e
topology: v5e:2x2
jax: 0.10.0
libtpu: 0.0.40
codegen_flags: <defaults>
</compile_context>

<pallas_src>
import jax
import jax.numpy as jnp
from jax.experimental import pallas as pl
from jax.experimental.pallas import tpu as pltpu

LANE = 128
SUBLANE = 8


def _round_up(x, m):
    return (x + m - 1) // m * m


# ----------------------------------------------------------------------------
# Kernel
# ----------------------------------------------------------------------------
def rnn_agent_kernel(
    obs_ref, h_ref,
    w_enc0_ref, b_enc0_ref,
    w_enc1_ref, b_enc1_ref,
    w_ih_ref, w_hh_ref, b_gi_ref, b_ghn_ref,
    w_out_ref, b_out_ref,
    q_ref, h_out_ref,
):
    Hp = h_ref.shape[-1]
    cdt = w_enc0_ref.dtype        # compute dtype fed to the MXU (f32 or bf16)

    obs = obs_ref[...]
    h_prev = h_ref[...]           # recurrent state kept in f32

    # ---- enc MLP: (Linear + ReLU) x 2 (n_layers = 2) ------------------------
    x = jnp.dot(obs.astype(cdt), w_enc0_ref[...],
                preferred_element_type=jnp.float32)
    x = jnp.maximum(x + b_enc0_ref[...], 0.0)
    x = jnp.dot(x.astype(cdt), w_enc1_ref[...],
                preferred_element_type=jnp.float32)
    x = jnp.maximum(x + b_enc1_ref[...], 0.0)

    # ---- GRUCell: two lane-aligned matmuls, no concat -----------------------
    # Column blocks of w_ih_p / w_hh_p (each Hp wide, lane-aligned):
    #   [0, Hp) -> r gate, [Hp, 2Hp) -> z gate, [2Hp, 3Hp) -> n gate.
    gi = jnp.dot(x.astype(cdt), w_ih_ref[...],
                 preferred_element_type=jnp.float32) + b_gi_ref[...]
    gh = jnp.dot(h_prev.astype(cdt), w_hh_ref[...],
                 preferred_element_type=jnp.float32)

    rz = jax.nn.sigmoid(gi[:, 0:2 * Hp] + gh[:, 0:2 * Hp])
    r = rz[:, 0:Hp]
    z = rz[:, Hp:2 * Hp]

    n = jnp.tanh(gi[:, 2 * Hp:3 * Hp] + r * (gh[:, 2 * Hp:3 * Hp] + b_ghn_ref[...]))
    # (1 - z) * n + z * h_prev  ==  n + z * (h_prev - n)   (one fewer mul)
    h_new = n + z * (h_prev - n)

    # ---- output head ---------------------------------------------------------
    q = jnp.dot(h_new.astype(cdt), w_out_ref[...],
                preferred_element_type=jnp.float32) + b_out_ref[...]

    q_ref[...] = q.astype(q_ref.dtype)
    h_out_ref[...] = h_new.astype(h_out_ref.dtype)


# ----------------------------------------------------------------------------
# Parameter init (PyTorch layouts) and packing (padded / fused / transposed)
# ----------------------------------------------------------------------------
def init_torch_params(key, obs_dim, hidden, n_actions):
    """Synthetic params in PyTorch layouts: Linear.weight [out, in], GRUCell
    weight_ih/hh [3H, in] with gate order (r, z, n)."""
    ks = jax.random.split(key, 10)
    s = 0.1
    f32 = jnp.float32
    return {
        "enc0_w": s * jax.random.normal(ks[0], (hidden, obs_dim), f32),
        "enc0_b": s * jax.random.normal(ks[1], (hidden,), f32),
        "enc1_w": s * jax.random.normal(ks[2], (hidden, hidden), f32),
        "enc1_b": s * jax.random.normal(ks[3], (hidden,), f32),
        "w_ih":   s * jax.random.normal(ks[4], (3 * hidden, hidden), f32),
        "b_ih":   s * jax.random.normal(ks[5], (3 * hidden,), f32),
        "w_hh":   s * jax.random.normal(ks[6], (3 * hidden, hidden), f32),
        "b_hh":   s * jax.random.normal(ks[7], (3 * hidden,), f32),
        "f_out_w": s * jax.random.normal(ks[8], (n_actions, hidden), f32),
        "f_out_b": s * jax.random.normal(ks[9], (n_actions,), f32),
    }


def pack_params(tp, compute_dtype=jnp.float32):
    """Transpose to [in, out], pad every feature dim to 128 lanes, place GRU
    gate blocks on lane-aligned column offsets, and pre-fuse biases."""
    f32 = jnp.float32
    hidden, obs_dim = tp["enc0_w"].shape
    n_actions = tp["f_out_w"].shape[0]
    H = hidden
    Hp = _round_up(hidden, LANE)
    Op = _round_up(obs_dim, LANE)
    Ap = _round_up(n_actions, LANE)

    def pad_mat(w_t, rows, cols):  # w_t is [in, out]
        return jnp.zeros((rows, cols), f32).at[:w_t.shape[0], :w_t.shape[1]].set(w_t)

    def pad_row(b, cols):
        return jnp.zeros((1, cols), f32).at[0, :b.shape[0]].set(b)

    w_ih_t = tp["w_ih"].T   # [H, 3H], column blocks r | z | n
    w_hh_t = tp["w_hh"].T   # [H, 3H]

    def place_gates(w_t):   # [H, 3H] -> [Hp, 3Hp], gate blocks at Hp offsets
        w = jnp.zeros((Hp, 3 * Hp), f32)
        for g in range(3):
            w = w.at[:H, g * Hp:g * Hp + H].set(w_t[:, g * H:(g + 1) * H])
        return w

    # Pre-fused biases (PyTorch GRUCell: r/z gates sum b_ih + b_hh; the n gate
    # keeps b_hh_n inside the r * (.) term).
    b_gi = jnp.zeros((1, 3 * Hp), f32)
    b_gi = b_gi.at[0, 0:H].set(tp["b_ih"][0:H] + tp["b_hh"][0:H])
    b_gi = b_gi.at[0, Hp:Hp + H].set(tp["b_ih"][H:2 * H] + tp["b_hh"][H:2 * H])
    b_gi = b_gi.at[0, 2 * Hp:2 * Hp + H].set(tp["b_ih"][2 * H:3 * H])
    b_ghn = pad_row(tp["b_hh"][2 * H:3 * H], Hp)

    packed = {
        "w_enc0": pad_mat(tp["enc0_w"].T, Op, Hp).astype(compute_dtype),
        "b_enc0": pad_row(tp["enc0_b"], Hp),
        "w_enc1": pad_mat(tp["enc1_w"].T, Hp, Hp).astype(compute_dtype),
        "b_enc1": pad_row(tp["enc1_b"], Hp),
        "w_ih":   place_gates(w_ih_t).astype(compute_dtype),
        "w_hh":   place_gates(w_hh_t).astype(compute_dtype),
        "b_gi":   b_gi,
        "b_ghn":  b_ghn,
        "w_out":  pad_mat(tp["f_out_w"].T, Hp, Ap).astype(compute_dtype),
        "b_out":  pad_row(tp["f_out_b"], Ap),
    }
    meta = {"obs_dim": obs_dim, "hidden": hidden, "n_actions": n_actions,
            "Op": Op, "Hp": Hp, "Ap": Ap}
    return packed, meta


# ----------------------------------------------------------------------------
# Wrapper
# ----------------------------------------------------------------------------
def rnn_agent_forward(obs, h, packed, meta):
    """obs: [B, obs_dim], h: [B, hidden]. Returns (q [B, n_actions], h_new [B, hidden])."""
    B = obs.shape[0]
    obs_dim, hidden, n_actions = meta["obs_dim"], meta["hidden"], meta["n_actions"]
    Op, Hp, Ap = meta["Op"], meta["Hp"], meta["Ap"]
    f32 = jnp.float32

    # Batch tiling: one sublane-padded tile for small batches; 128-row tiles
    # (grid axis marked "parallel" -> megacore / v7x dual-TC) for large ones.
    TB = LANE if B >= LANE else _round_up(B, SUBLANE)
    Bp = _round_up(B, TB)
    grid = (Bp // TB,)

    obs_p = jnp.zeros((Bp, Op), f32).at[:B, :obs_dim].set(obs.astype(f32))
    h_p = jnp.zeros((Bp, Hp), f32).at[:B, :hidden].set(h.astype(f32))

    def batch_spec(cols):
        return pl.BlockSpec((TB, cols), lambda i: (i, 0))

    def const_spec(shape):
        # Constant block index -> fetched once, resident in VMEM across tiles.
        return pl.BlockSpec(shape, lambda i: (0, 0))

    args = (
        obs_p, h_p,
        packed["w_enc0"], packed["b_enc0"],
        packed["w_enc1"], packed["b_enc1"],
        packed["w_ih"], packed["w_hh"], packed["b_gi"], packed["b_ghn"],
        packed["w_out"], packed["b_out"],
    )
    in_specs = [
        batch_spec(Op), batch_spec(Hp),
        const_spec(packed["w_enc0"].shape), const_spec(packed["b_enc0"].shape),
        const_spec(packed["w_enc1"].shape), const_spec(packed["b_enc1"].shape),
        const_spec(packed["w_ih"].shape), const_spec(packed["w_hh"].shape),
        const_spec(packed["b_gi"].shape), const_spec(packed["b_ghn"].shape),
        const_spec(packed["w_out"].shape), const_spec(packed["b_out"].shape),
    ]
    out_specs = (batch_spec(Ap), batch_spec(Hp))
    out_shape = (
        jax.ShapeDtypeStruct((Bp, Ap), f32),
        jax.ShapeDtypeStruct((Bp, Hp), f32),
    )

    q_p, h_new_p = pl.pallas_call(
        rnn_agent_kernel,
        grid=grid,
        in_specs=in_specs,
        out_specs=out_specs,
        out_shape=out_shape,
        input_output_aliases={1: 1},   # in-place hidden-state update
        compiler_params=pltpu.CompilerParams(
            dimension_semantics=("parallel",),
        ),
    )(*args)

    # Padded lanes are exactly zero by construction; slice back to model shapes.
    return q_p[:B, :n_actions], h_new_p[:B, :hidden]


# ----------------------------------------------------------------------------
# Pure-JAX reference of the exact PyTorch math (unpadded, unfused)
# ----------------------------------------------------------------------------
def reference_forward(obs, h, tp):
    x = jnp.maximum(obs @ tp["enc0_w"].T + tp["enc0_b"], 0.0)
    x = jnp.maximum(x @ tp["enc1_w"].T + tp["enc1_b"], 0.0)
    H = h.shape[-1]
    gi = x @ tp["w_ih"].T + tp["b_ih"]
    gh = h @ tp["w_hh"].T + tp["b_hh"]
    r = jax.nn.sigmoid(gi[:, :H] + gh[:, :H])
    z = jax.nn.sigmoid(gi[:, H:2 * H] + gh[:, H:2 * H])
    n = jnp.tanh(gi[:, 2 * H:] + r * gh[:, 2 * H:])
    h_new = (1.0 - z) * n + z * h
    q = h_new @ tp["f_out_w"].T + tp["f_out_b"]
    return q, h_new


if __name__ == "__main__":
    # Shapes consistent with the module: obs [B, obs_shape], h [B, hidden_size]
    batch, obs_dim, hidden, n_actions = 4, 16, 32, 6   # args.n_layers = 2

    key = jax.random.PRNGKey(0)
    k_obs, k_param = jax.random.split(key)

    obs = jax.random.normal(k_obs, (batch, obs_dim), jnp.float32)
    h0 = jnp.zeros((batch, hidden), jnp.float32)       # init_hidden broadcast

    torch_params = init_torch_params(k_param, obs_dim, hidden, n_actions)
    q_ref, h_ref = reference_forward(obs, h0, torch_params)

    # f32 compute path (exact check)
    packed, meta = pack_params(torch_params, compute_dtype=jnp.float32)
    q, h_new = rnn_agent_forward(obs, h0, packed, meta)
    q, h_new = jax.block_until_ready((q, h_new))
    assert q.shape == (batch, n_actions) and h_new.shape == (batch, hidden)
    assert jnp.allclose(q, q_ref, atol=1e-5), "q mismatch (f32)"
    assert jnp.allclose(h_new, h_ref, atol=1e-5), "h mismatch (f32)"

    # bf16-weight path (v6e/v7x MXU-native); accumulation and gate math stay f32.
    packed_bf16, meta_bf16 = pack_params(torch_params, compute_dtype=jnp.bfloat16)
    q_b, h_b = rnn_agent_forward(obs, h0, packed_bf16, meta_bf16)
    q_b, h_b = jax.block_until_ready((q_b, h_b))
    assert jnp.allclose(q_b, q_ref, atol=2e-2), "q mismatch (bf16)"
    assert jnp.allclose(h_b, h_ref, atol=2e-2), "h mismatch (bf16)"

    print("KERNEL_OK")
</pallas_src>

<mosaic_0001>
module attributes {stable_mosaic.version = 11 : i64} {
  func.func @rnn_agent_kernel(%arg0: i32, %arg1: memref<8x128xf32, #tpu.memory_space<vmem>>, %arg2: memref<8x128xf32, #tpu.memory_space<vmem>>, %arg3: memref<128x128xf32, #tpu.memory_space<vmem>>, %arg4: memref<1x128xf32, #tpu.memory_space<vmem>>, %arg5: memref<128x128xf32, #tpu.memory_space<vmem>>, %arg6: memref<1x128xf32, #tpu.memory_space<vmem>>, %arg7: memref<128x384xf32, #tpu.memory_space<vmem>>, %arg8: memref<128x384xf32, #tpu.memory_space<vmem>>, %arg9: memref<1x384xf32, #tpu.memory_space<vmem>>, %arg10: memref<1x128xf32, #tpu.memory_space<vmem>>, %arg11: memref<128x128xf32, #tpu.memory_space<vmem>>, %arg12: memref<1x128xf32, #tpu.memory_space<vmem>>, %arg13: memref<8x128xf32, #tpu.memory_space<vmem>>, %arg14: memref<8x128xf32, #tpu.memory_space<vmem>>) attributes {dimension_semantics = [#tpu.dimension_semantics<parallel>], iteration_bounds = array<i64: 1>, scalar_prefetch = 0 : i64, scratch_operands = 0 : i64, tpu.core_type = #tpu.core_type<tc>, window_params = [{transform_indices = @transform_0, window_bounds = array<i64: 8, 128>}, {transform_indices = @transform_1, window_bounds = array<i64: 8, 128>}, {pipeline_mode = #tpu.pipeline_mode<synchronous>, transform_indices = @transform_2, window_bounds = array<i64: 128, 128>}, {pipeline_mode = #tpu.pipeline_mode<synchronous>, transform_indices = @transform_3, window_bounds = array<i64: 1, 128>}, {pipeline_mode = #tpu.pipeline_mode<synchronous>, transform_indices = @transform_4, window_bounds = array<i64: 128, 128>}, {pipeline_mode = #tpu.pipeline_mode<synchronous>, transform_indices = @transform_5, window_bounds = array<i64: 1, 128>}, {pipeline_mode = #tpu.pipeline_mode<synchronous>, transform_indices = @transform_6, window_bounds = array<i64: 128, 384>}, {pipeline_mode = #tpu.pipeline_mode<synchronous>, transform_indices = @transform_7, window_bounds = array<i64: 128, 384>}, {pipeline_mode = #tpu.pipeline_mode<synchronous>, transform_indices = @transform_8, window_bounds = array<i64: 1, 384>}, {pipeline_mode = #tpu.pipeline_mode<synchronous>, transform_indices = @transform_9, window_bounds = array<i64: 1, 128>}, {pipeline_mode = #tpu.pipeline_mode<synchronous>, transform_indices = @transform_10, window_bounds = array<i64: 128, 128>}, {pipeline_mode = #tpu.pipeline_mode<synchronous>, transform_indices = @transform_11, window_bounds = array<i64: 1, 128>}, {transform_indices = @transform_12, window_bounds = array<i64: 8, 128>}, {transform_indices = @transform_13, window_bounds = array<i64: 8, 128>}]} {
    %c0 = arith.constant 0 : index
    %c0_0 = arith.constant 0 : index
    %0 = vector.load %arg1[%c0, %c0_0] : memref<8x128xf32, #tpu.memory_space<vmem>>, vector<8x128xf32>
    %c0_1 = arith.constant 0 : index
    %c0_2 = arith.constant 0 : index
    %1 = vector.load %arg2[%c0_1, %c0_2] : memref<8x128xf32, #tpu.memory_space<vmem>>, vector<8x128xf32>
    %c0_3 = arith.constant 0 : index
    %c0_4 = arith.constant 0 : index
    %2 = vector.load %arg3[%c0_3, %c0_4] : memref<128x128xf32, #tpu.memory_space<vmem>>, vector<128x128xf32>
    %cst = arith.constant dense<0.000000e+00> : vector<8x128xf32>
    %3 = tpu.matmul %0, %2, %cst {dimension_numbers = #tpu.dot_dimension_numbers<[1], [0], [0], [1], [0, 0, 1, 1], [], []>} : vector<8x128xf32>, vector<128x128xf32>, vector<8x128xf32> -> vector<8x128xf32>
    %c0_5 = arith.constant 0 : index
    %c0_6 = arith.constant 0 : index
    %4 = vector.load %arg4[%c0_5, %c0_6] : memref<1x128xf32, #tpu.memory_space<vmem>>, vector<1x128xf32>
    %5 = vector.broadcast %4 : vector<1x128xf32> to vector<8x128xf32>
    %6 = arith.addf %3, %5 : vector<8x128xf32>
    %cst_7 = arith.constant 0.000000e+00 : f32
    %7 = vector.broadcast %cst_7 : f32 to vector<8x128xf32>
    %8 = arith.maximumf %6, %7 : vector<8x128xf32>
    %c0_8 = arith.constant 0 : index
    %c0_9 = arith.constant 0 : index
    %9 = vector.load %arg5[%c0_8, %c0_9] : memref<128x128xf32, #tpu.memory_space<vmem>>, vector<128x128xf32>
    %cst_10 = arith.constant dense<0.000000e+00> : vector<8x128xf32>
    %10 = tpu.matmul %8, %9, %cst_10 {dimension_numbers = #tpu.dot_dimension_numbers<[1], [0], [0], [1], [0, 0, 1, 1], [], []>} : vector<8x128xf32>, vector<128x128xf32>, vector<8x128xf32> -> vector<8x128xf32>
    %c0_11 = arith.constant 0 : index
    %c0_12 = arith.constant 0 : index
    %11 = vector.load %arg6[%c0_11, %c0_12] : memref<1x128xf32, #tpu.memory_space<vmem>>, vector<1x128xf32>
    %12 = vector.broadcast %11 : vector<1x128xf32> to vector<8x128xf32>
    %13 = arith.addf %10, %12 : vector<8x128xf32>
    %cst_13 = arith.constant 0.000000e+00 : f32
    %14 = vector.broadcast %cst_13 : f32 to vector<8x128xf32>
    %15 = arith.maximumf %13, %14 : vector<8x128xf32>
    %c0_14 = arith.constant 0 : index
    %c0_15 = arith.constant 0 : index
    %16 = vector.load %arg7[%c0_14, %c0_15] : memref<128x384xf32, #tpu.memory_space<vmem>>, vector<128x384xf32>
    %cst_16 = arith.constant dense<0.000000e+00> : vector<8x384xf32>
    %17 = tpu.matmul %15, %16, %cst_16 {dimension_numbers = #tpu.dot_dimension_numbers<[1], [0], [0], [1], [0, 0, 1, 1], [], []>} : vector<8x128xf32>, vector<128x384xf32>, vector<8x384xf32> -> vector<8x384xf32>
    %c0_17 = arith.constant 0 : index
    %c0_18 = arith.constant 0 : index
    %18 = vector.load %arg9[%c0_17, %c0_18] : memref<1x384xf32, #tpu.memory_space<vmem>>, vector<1x384xf32>
    %19 = vector.broadcast %18 : vector<1x384xf32> to vector<8x384xf32>
    %20 = arith.addf %17, %19 : vector<8x384xf32>
    %c0_19 = arith.constant 0 : index
    %c0_20 = arith.constant 0 : index
    %21 = vector.load %arg8[%c0_19, %c0_20] : memref<128x384xf32, #tpu.memory_space<vmem>>, vector<128x384xf32>
    %cst_21 = arith.constant dense<0.000000e+00> : vector<8x384xf32>
    %22 = tpu.matmul %1, %21, %cst_21 {dimension_numbers = #tpu.dot_dimension_numbers<[1], [0], [0], [1], [0, 0, 1, 1], [], []>} : vector<8x128xf32>, vector<128x384xf32>, vector<8x384xf32> -> vector<8x384xf32>
    %23 = vector.extract_strided_slice %20 {offsets = [0, 0], sizes = [8, 256], strides = [1, 1]} : vector<8x384xf32> to vector<8x256xf32>
    %24 = vector.extract_strided_slice %22 {offsets = [0, 0], sizes = [8, 256], strides = [1, 1]} : vector<8x384xf32> to vector<8x256xf32>
    %25 = arith.addf %23, %24 : vector<8x256xf32>
    %26 = arith.negf %25 : vector<8x256xf32>
    %27 = math.exp %26 : vector<8x256xf32>
    %cst_22 = arith.constant 1.000000e+00 : f32
    %28 = vector.broadcast %cst_22 : f32 to vector<8x256xf32>
    %29 = arith.addf %28, %27 : vector<8x256xf32>
    %30 = arith.divf %28, %29 : vector<8x256xf32>
    %31 = vector.extract_strided_slice %30 {offsets = [0, 0], sizes = [8, 128], strides = [1, 1]} : vector<8x256xf32> to vector<8x128xf32>
    %32 = vector.extract_strided_slice %30 {offsets = [0, 128], sizes = [8, 128], strides = [1, 1]} : vector<8x256xf32> to vector<8x128xf32>
    %33 = vector.extract_strided_slice %20 {offsets = [0, 256], sizes = [8, 128], strides = [1, 1]} : vector<8x384xf32> to vector<8x128xf32>
    %34 = vector.extract_strided_slice %22 {offsets = [0, 256], sizes = [8, 128], strides = [1, 1]} : vector<8x384xf32> to vector<8x128xf32>
    %c0_23 = arith.constant 0 : index
    %c0_24 = arith.constant 0 : index
    %35 = vector.load %arg10[%c0_23, %c0_24] : memref<1x128xf32, #tpu.memory_space<vmem>>, vector<1x128xf32>
    %36 = vector.broadcast %35 : vector<1x128xf32> to vector<8x128xf32>
    %37 = arith.addf %34, %36 : vector<8x128xf32>
    %38 = arith.mulf %31, %37 : vector<8x128xf32>
    %39 = arith.addf %33, %38 : vector<8x128xf32>
    %40 = math.tanh %39 : vector<8x128xf32>
    %41 = arith.subf %1, %40 : vector<8x128xf32>
    %42 = arith.mulf %32, %41 : vector<8x128xf32>
    %43 = arith.addf %40, %42 : vector<8x128xf32>
    %c0_25 = arith.constant 0 : index
    %c0_26 = arith.constant 0 : index
    %44 = vector.load %arg11[%c0_25, %c0_26] : memref<128x128xf32, #tpu.memory_space<vmem>>, vector<128x128xf32>
    %cst_27 = arith.constant dense<0.000000e+00> : vector<8x128xf32>
    %45 = tpu.matmul %43, %44, %cst_27 {dimension_numbers = #tpu.dot_dimension_numbers<[1], [0], [0], [1], [0, 0, 1, 1], [], []>} : vector<8x128xf32>, vector<128x128xf32>, vector<8x128xf32> -> vector<8x128xf32>
    %c0_28 = arith.constant 0 : index
    %c0_29 = arith.constant 0 : index
    %46 = vector.load %arg12[%c0_28, %c0_29] : memref<1x128xf32, #tpu.memory_space<vmem>>, vector<1x128xf32>
    %47 = vector.broadcast %46 : vector<1x128xf32> to vector<8x128xf32>
    %48 = arith.addf %45, %47 : vector<8x128xf32>
    %c0_30 = arith.constant 0 : index
    %c0_31 = arith.constant 0 : index
    %49 = vector.load %arg13[%c0_30, %c0_31] : memref<8x128xf32, #tpu.memory_space<vmem>>, vector<8x128xf32>
    tpu.vector_store %arg13[%c0_30, %c0_31], %48 {strides = array<i32>} : memref<8x128xf32, #tpu.memory_space<vmem>>, vector<8x128xf32>,
    %c0_32 = arith.constant 0 : index
    %c0_33 = arith.constant 0 : index
    %50 = vector.load %arg14[%c0_32, %c0_33] : memref<8x128xf32, #tpu.memory_space<vmem>>, vector<8x128xf32>
    tpu.vector_store %arg14[%c0_32, %c0_33], %43 {strides = array<i32>} : memref<8x128xf32, #tpu.memory_space<vmem>>, vector<8x128xf32>,
    return
  }
  func.func @transform_0(%arg0: i32) -> (i32, i32) {
    %c0_i32 = arith.constant 0 : i32
    %c0_i32_0 = arith.constant 0 : i32
    return %arg0, %c0_i32 : i32, i32
  }
  func.func @transform_1(%arg0: i32) -> (i32, i32) {
    %c0_i32 = arith.constant 0 : i32
    %c0_i32_0 = arith.constant 0 : i32
    return %arg0, %c0_i32 : i32, i32
  }
  func.func @transform_2(%arg0: i32) -> (i32, i32) {
    %c0_i32 = arith.constant 0 : i32
    %c0_i32_0 = arith.constant 0 : i32
    %c0_i32_1 = arith.constant 0 : i32
    return %c0_i32, %c0_i32_0 : i32, i32
  }
  func.func @transform_3(%arg0: i32) -> (i32, i32) {
    %c0_i32 = arith.constant 0 : i32
    %c0_i32_0 = arith.constant 0 : i32
    %c0_i32_1 = arith.constant 0 : i32
    return %c0_i32, %c0_i32_0 : i32, i32
  }
  func.func @transform_4(%arg0: i32) -> (i32, i32) {
    %c0_i32 = arith.constant 0 : i32
    %c0_i32_0 = arith.constant 0 : i32
    %c0_i32_1 = arith.constant 0 : i32
    return %c0_i32, %c0_i32_0 : i32, i32
  }
  func.func @transform_5(%arg0: i32) -> (i32, i32) {
    %c0_i32 = arith.constant 0 : i32
    %c0_i32_0 = arith.constant 0 : i32
    %c0_i32_1 = arith.constant 0 : i32
    return %c0_i32, %c0_i32_0 : i32, i32
  }
  func.func @transform_6(%arg0: i32) -> (i32, i32) {
    %c0_i32 = arith.constant 0 : i32
    %c0_i32_0 = arith.constant 0 : i32
    %c0_i32_1 = arith.constant 0 : i32
    return %c0_i32, %c0_i32_0 : i32, i32
  }
  func.func @transform_7(%arg0: i32) -> (i32, i32) {
    %c0_i32 = arith.constant 0 : i32
    %c0_i32_0 = arith.constant 0 : i32
    %c0_i32_1 = arith.constant 0 : i32
    return %c0_i32, %c0_i32_0 : i32, i32
  }
  func.func @transform_8(%arg0: i32) -> (i32, i32) {
    %c0_i32 = arith.constant 0 : i32
    %c0_i32_0 = arith.constant 0 : i32
    %c0_i32_1 = arith.constant 0 : i32
    return %c0_i32, %c0_i32_0 : i32, i32
  }
  func.func @transform_9(%arg0: i32) -> (i32, i32) {
    %c0_i32 = arith.constant 0 : i32
    %c0_i32_0 = arith.constant 0 : i32
    %c0_i32_1 = arith.constant 0 : i32
    return %c0_i32, %c0_i32_0 : i32, i32
  }
  func.func @transform_10(%arg0: i32) -> (i32, i32) {
    %c0_i32 = arith.constant 0 : i32
    %c0_i32_0 = arith.constant 0 : i32
    %c0_i32_1 = arith.constant 0 : i32
    return %c0_i32, %c0_i32_0 : i32, i32
  }
  func.func @transform_11(%arg0: i32) -> (i32, i32) {
    %c0_i32 = arith.constant 0 : i32
    %c0_i32_0 = arith.constant 0 : i32
    %c0_i32_1 = arith.constant 0 : i32
    return %c0_i32, %c0_i32_0 : i32, i32
  }
  func.func @transform_12(%arg0: i32) -> (i32, i32) {
    %c0_i32 = arith.constant 0 : i32
    %c0_i32_0 = arith.constant 0 : i32
    return %arg0, %c0_i32 : i32, i32
  }
  func.func @transform_13(%arg0: i32) -> (i32, i32) {
    %c0_i32 = arith.constant 0 : i32
    %c0_i32_0 = arith.constant 0 : i32
    return %arg0, %c0_i32 : i32, i32
  }
}

</mosaic_0001>

<bundles_post_ra>
// kernel: tpu_custom_call.1
= control target key start
LH: loop header
LB: loop body
LE: loop exit
PB: predicated region body
PF: predicated region fallthrough
CT: control target
= control target key end

     0   :  { %19 = vsyncpa [#allocation3], 0  ;;  %s950_s0 = inlined_call_operand.vmem [shape: f32[8,128], index: 0, kind: input, shape index: {}]   ;;  %s951_s1 = inlined_call_operand.hbm [shape: f32[8,128], index: 1, kind: input, shape index: {}, may-alias: {1,13}]   ;;  %s952_s2 = inlined_call_operand.hbm [shape: f32[128,128], index: 2, kind: input, shape index: {}]   ;;  %s953_s3 = inlined_call_operand.vmem [shape: f32[1,128], index: 3, kind: input, shape index: {}]   ;;  %s954_s4 = inlined_call_operand.hbm [shape: f32[128,128], index: 4, kind: input, shape index: {}]   ;;  %s955_s5 = inlined_call_operand.vmem [shape: f32[1,128], index: 5, kind: input, shape index: {}]   ;;  %s956_s6 = inlined_call_operand.hbm [shape: f32[128,384], index: 6, kind: input, shape index: {}]   ;;  %s957_s7 = inlined_call_operand.hbm [shape: f32[128,384], index: 7, kind: input, shape index: {}]   ;;  %s958_s8 = inlined_call_operand.vmem [shape: f32[1,384], index: 8, kind: input, shape index: {}]   ;;  %s959_s9 = inlined_call_operand.vmem [shape: f32[1,128], index: 9, kind: input, shape index: {}]   ;;  %s960_s10 = inlined_call_operand.hbm [shape: f32[128,128], index: 10, kind: input, shape index: {}]   ;;  %s961_s11 = inlined_call_operand.vmem [shape: f32[1,128], index: 11, kind: input, shape index: {}]   ;;  %s962_s12 = inlined_call_operand.hbm [shape: f32[8,128], index: 12, kind: output, shape index: {0}]   ;;  %s963_s13 = inlined_call_operand.hbm [shape: f32[8,128], index: 13, kind: output, shape index: {1}, may-alias: {1,13}]  }
   0x1   :  { %20 = vsyncpa [#allocation6], 0 }
   0x2   :  { %21 = vsyncpa [#allocation9], 0 }
   0x3   :  { %22 = vsyncpa [#allocation12], 0 }
   0x4   :  { %23 = vsyncpa [#allocation4], 0  ;;  %s42_s27 = sshll.u32 %s952_s2, 4  ;;  %s43_s27 = int_to_ptr.hbm [resolvable:$true] %s42_s27 }
   0x5   :  { %24 = vsyncpa [#allocation15], 0  ;;  %s806_s28 = smov [#allocation5]   ;;  %s72_s15 = sshll.u32 %s956_s6, 4  ;;  %s73_s15 = int_to_ptr.hbm [resolvable:$true] %s72_s15 }
   0x6   :  { %s44_s29 = sshll.u32 %s806_s28, 4  ;;  %s807_s16 = smov 128   ;;  %s45_s29 = int_to_ptr.vmem [resolvable:$true] %s44_s29 }
   0x7   :  { %s808_s17 = smov 8   ;;  %s809_s18 = smov [#allocation8]  }
   0x8   :  { %50 = dma.hbm_to_vmem [thread:$0]  %s43_s27, 2048, %s45_s29, [#allocation6], %s807_s16, %s807_s16, %s808_s17  }
   0x9   :  { %s74_s19 = sshll.u32 %s809_s18, 4  ;;  %s810_s2 = smov 384   ;;  %s75_s19 = int_to_ptr.vmem [resolvable:$true] %s74_s19 }
   0xa   :  { %s811_s20 = smov 24   ;;  %s32_s23 = sshll.u32 %s951_s1, 4  ;;  %s33_s23 = int_to_ptr.hbm [resolvable:$true] %s32_s23 }
   0xb   :  { %80 = dma.hbm_to_vmem [thread:$0]  %s73_s15, 6144, %s75_s19, [#allocation9], %s810_s2, %s810_s2, %s811_s20  }
   0xc   :  { %s812_s24 = smov [#allocation2]   ;;  %s57_s28 = sshll.u32 %s954_s4, 4  ;;  %s58_s28 = int_to_ptr.hbm [resolvable:$true] %s57_s28 }
   0xd   :  { %s34_s6 = sshll.u32 %s812_s24, 4  ;;  %s813_s27 = smov [#allocation7]   ;;  %s35_s6 = int_to_ptr.vmem [resolvable:$true] %s34_s6 }
   0xe   :  { %37 = dma.hbm_to_vmem [thread:$0]  %s33_s23, 128, %s35_s6, [#allocation3]  }
   0xf   :  { %s59_s29 = sshll.u32 %s813_s27, 4  ;;  %s85_s15 = sshll.u32 %s957_s7, 4  ;;  %s60_s29 = int_to_ptr.vmem [resolvable:$true] %s59_s29  ;;  %s86_s15 = int_to_ptr.hbm [resolvable:$true] %s85_s15 }
  0x10   :  { %65 = dma.hbm_to_vmem [thread:$0]  %s58_s28, 2048, %s60_s29, [#allocation6], %s807_s16, %s807_s16, %s808_s17  }
  0x11   :  { %s102_s19 = sshll.u32 %s960_s10, 4  ;;  %s814_s21 = smov [#allocation10]   ;;  %s103_s19 = int_to_ptr.hbm [resolvable:$true] %s102_s19 }
  0x12   :  { %s87_s4 = sshll.u32 %s814_s21, 4  ;;  %s815_s22 = smov [#allocation11]   ;;  %s88_s4 = int_to_ptr.vmem [resolvable:$true] %s87_s4 }
  0x13   :  { %93 = dma.hbm_to_vmem [thread:$0]  %s86_s15, 6144, %s88_s4, [#allocation9], %s810_s2, %s810_s2, %s811_s20  }
  0x14   :  { %s104_s23 = sshll.u32 %s815_s22, 4  ;;  %s105_s23 = int_to_ptr.vmem [resolvable:$true] %s104_s23 }
  0x15   :  { %110 = dma.hbm_to_vmem [thread:$0]  %s103_s19, 2048, %s105_s23, [#allocation12], %s807_s16, %s807_s16, %s808_s17  }
  0x16   :  { %794 = dma.done.wait [#allocation3], 128  }
  0x17   :  { %795 = vsyncadd [#allocation3], 4294967168 }
  0x18   :  { %796 = dma.done.wait [#allocation6], 4096  }
  0x19   :  { %797 = vsyncadd [#allocation6], 4294963200 }
  0x1a   :  { %798 = dma.done.wait [#allocation9], 12288  }
  0x1b   :  { %799 = vsyncadd [#allocation9], 4294955008 }
  0x1c   :  { %800 = dma.done.wait [#allocation12], 2048  }
  0x1d   :  { %801 = vsyncadd [#allocation12], 4294965248  ;;  %v154_v0 = vld [vmem:[#allocation5 + $0x78] sm:$0xff]  ;;  %v153_v1 = vld [vmem:[#allocation5 + $0x70] sm:$0xff]  ;;  %s556_s26 = sshll.u32 %s963_s13, 4  ;;  %s817_s29 = smov [#allocation13]   ;;  %s557_s26 = int_to_ptr.hbm [resolvable:$true] %s556_s26 }
  0x1e   :  { %159 = vmatpush.msra.mxu0 %v154_v0  ;;  %v152_v2 = vld [vmem:[#allocation5 + $0x68] sm:$0xff]  ;;  %v151_v3 = vld [vmem:[#allocation5 + $0x60] sm:$0xff]  ;;  %v195_v4 = vld [vmem:[#allocation7 + $0x78] sm:$0xff]  ;;  %s543_s30 = sshll.u32 %s817_s29, 4  ;;  %s545_s1 = sshll.u32 %s962_s12, 4  ;;  %s544_s30 = int_to_ptr.vmem [resolvable:$true] %s543_s30  ;;  %s546_s1 = int_to_ptr.hbm [resolvable:$true] %s545_s1 }
  0x1f   :  { %v150_v5 = vld [vmem:[#allocation5 + $0x58] sm:$0xff]  ;;  %200 = vmatpush.msra.mxu1 %v195_v4  ;;  %v194_v6 = vld [vmem:[#allocation7 + $0x70] sm:$0xff]  ;;  %v193_v7 = vld [vmem:[#allocation7 + $0x68] sm:$0xff] }
  0x20   :  { %160 = vmatpush.msra.mxu0 %v153_v1  ;;  %v149_v8 = vld [vmem:[#allocation5 + $0x50] sm:$0xff]  ;;  %v192_v9 = vld [vmem:[#allocation7 + $0x60] sm:$0xff]  ;;  %v148_v10 = vld [vmem:[#allocation5 + $0x48] sm:$0xff] }
  0x21   :  { %201 = vmatpush.msra.mxu1 %v194_v6  ;;  %v191_v11 = vld [vmem:[#allocation7 + $0x58] sm:$0xff]  ;;  %v147_v12 = vld [vmem:[#allocation5 + $0x40] sm:$0xff]  ;;  %v190_v13 = vld [vmem:[#allocation7 + $0x50] sm:$0xff] }
  0x22   :  { %161 = vmatpush.msra.mxu0 %v152_v2  ;;  %v146_v14 = vld [vmem:[#allocation5 + $0x38] sm:$0xff]  ;;  %v189_v15 = vld [vmem:[#allocation7 + $0x48] sm:$0xff]  ;;  %v145_v16 = vld [vmem:[#allocation5 + $0x30] sm:$0xff] }
  0x23   :  { %202 = vmatpush.msra.mxu1 %v193_v7  ;;  %v188_v17 = vld [vmem:[#allocation7 + $0x40] sm:$0xff]  ;;  %v144_v18 = vld [vmem:[#allocation5 + $0x28] sm:$0xff]  ;;  %v187_v19 = vld [vmem:[#allocation7 + $0x38] sm:$0xff] }
  0x24   :  { %162 = vmatpush.msra.mxu0 %v151_v3  ;;  %v143_v20 = vld [vmem:[#allocation5 + $0x20] sm:$0xff]  ;;  %v186_v21 = vld [vmem:[#allocation7 + $0x30] sm:$0xff]  ;;  %v142_v22 = vld [vmem:[#allocation5 + $0x18] sm:$0xff] }
  0x25   :  { %203 = vmatpush.msra.mxu1 %v192_v9  ;;  %v185_v23 = vld [vmem:[#allocation7 + $0x28] sm:$0xff]  ;;  %v141_v24 = vld [vmem:[#allocation5 + $0x10] sm:$0xff]  ;;  %v184_v25 = vld [vmem:[#allocation7 + $0x20] sm:$0xff] }
  0x26   :  { %163 = vmatpush.msra.mxu0 %v150_v5  ;;  %v140_v26 = vld [vmem:[#allocation5 + $0x8] sm:$0xff]  ;;  %v183_v27 = vld [vmem:[#allocation7 + $0x18] sm:$0xff]  ;;  %v139_v28 = vld [vmem:[#allocation5] sm:$0xff] }
  0x27   :  { %204 = vmatpush.msra.mxu1 %v191_v11  ;;  %v137_v29 = vld [vmem:[%s950_s0] sm:$0xff]  ;;  %v182_v30 = vld [vmem:[#allocation7 + $0x10] sm:$0xff]  ;;  %v181_v31 = vld [vmem:[#allocation7 + $0x8] sm:$0xff] }
  0x28   :  { %164 = vmatpush.msra.mxu0 %v149_v8  ;;  %v180_v32 = vld [vmem:[#allocation7] sm:$0xff]  ;;  %v266_v33 = vld [vmem:[#allocation8 + $0x168] sm:$0xff]  ;;  %v263_v34 = vld [vmem:[#allocation8 + $0x150] sm:$0xff] }
  0x29   :  { %205 = vmatpush.msra.mxu1 %v190_v13  ;;  %277 = vmatpush.msra.mxu2 %v266_v33  ;;  %v260_v35 = vld [vmem:[#allocation8 + $0x138] sm:$0xff]  ;;  %v257_v36 = vld [vmem:[#allocation8 + $0x120] sm:$0xff]  ;;  %v267_v37 = vld [vmem:[#allocation8 + $0x170] sm:$0xff] }
  0x2a   :  { %165 = vmatpush.msra.mxu0 %v148_v10  ;;  %v268_v38 = vld [vmem:[#allocation8 + $0x178] sm:$0xff]  ;;  %297 = vmatpush.msra.mxu3 %v267_v37  ;;  %v265_v40 = vld [vmem:[#allocation8 + $0x160] sm:$0xff]  ;;  %v254_v41 = vld [vmem:[#allocation8 + $0x108] sm:$0xff] }
  0x2b   :  { %206 = vmatpush.msra.mxu1 %v189_v15  ;;  %278 = vmatpush.msra.mxu2 %v263_v34  ;;  %v264_v39 = vld [vmem:[#allocation8 + $0x158] sm:$0xff]  ;;  %v261_v42 = vld [vmem:[#allocation8 + $0x140] sm:$0xff]  ;;  %v262_v43 = vld [vmem:[#allocation8 + $0x148] sm:$0xff] }
  0x2c   :  { %166 = vmatpush.msra.mxu0 %v147_v12  ;;  %298 = vmatpush.msra.mxu3 %v264_v39  ;;  %v251_v44 = vld [vmem:[#allocation8 + $0xf0] sm:$0xff]  ;;  %v258_v45 = vld [vmem:[#allocation8 + $0x128] sm:$0xff]  ;;  %v248_v48 = vld [vmem:[#allocation8 + $0xd8] sm:$0xff] }
  0x2d   :  { %207 = vmatpush.msra.mxu1 %v188_v17  ;;  %279 = vmatpush.msra.mxu2 %v260_v35  ;;  %v382_v46 = vld [vmem:[#allocation10 + $0x168] sm:$0xff]  ;;  %v259_v47 = vld [vmem:[#allocation8 + $0x130] sm:$0xff]  ;;  %v256_v51 = vld [vmem:[#allocation8 + $0x118] sm:$0xff] }
  0x2e   :  { %167 = vmatpush.msra.mxu0 %v146_v14  ;;  %299 = vmatpush.msra.mxu3 %v261_v42  ;;  %v255_v49 = vld [vmem:[#allocation8 + $0x110] sm:$0xff]  ;;  %v376_v52 = vld [vmem:[#allocation10 + $0x138] sm:$0xff]  ;;  %v245_v53 = vld [vmem:[#allocation8 + $0xc0] sm:$0xff] }
  0x2f   :  { %208 = vmatpush.msra.mxu1 %v187_v19  ;;  %280 = vmatpush.msra.mxu2 %v257_v36  ;;  %v379_v50 = vld [vmem:[#allocation10 + $0x150] sm:$0xff]  ;;  %v252_v54 = vld [vmem:[#allocation8 + $0xf8] sm:$0xff]  ;;  %v253_v55 = vld [vmem:[#allocation8 + $0x100] sm:$0xff] }
  0x30   :  { %168 = vmatpush.msra.mxu0 %v145_v16  ;;  %300 = vmatpush.msra.mxu3 %v258_v45  ;;  %v373_v56 = vld [vmem:[#allocation10 + $0x120] sm:$0xff]  ;;  %v242_v57 = vld [vmem:[#allocation8 + $0xa8] sm:$0xff]  ;;  %v239_v61 = vld [vmem:[#allocation8 + $0x90] sm:$0xff] }
  0x31   :  { %209 = vmatpush.msra.mxu1 %v186_v21  ;;  %281 = vmatpush.msra.mxu2 %v254_v41  ;;  %v249_v58 = vld [vmem:[#allocation8 + $0xe0] sm:$0xff]  ;;  %v250_v59 = vld [vmem:[#allocation8 + $0xe8] sm:$0xff]  ;;  %v247_v63 = vld [vmem:[#allocation8 + $0xd0] sm:$0xff] }
  0x32   :  { %169 = vmatpush.msra.mxu0 %v144_v18  ;;  %301 = vmatpush.msra.mxu3 %v255_v49  ;;  %v370_v60 = vld [vmem:[#allocation10 + $0x108] sm:$0xff]  ;;  %v367_v0 = vld [vmem:[#allocation10 + $0xf0] sm:$0xff]  ;;  %v236_v1 = vld [vmem:[#allocation8 + $0x78] sm:$0xff] }
  0x33   :  { %210 = vmatpush.msra.mxu1 %v185_v23  ;;  %282 = vmatpush.msra.mxu2 %v251_v44  ;;  %v246_v62 = vld [vmem:[#allocation8 + $0xc8] sm:$0xff]  ;;  %v243_v2 = vld [vmem:[#allocation8 + $0xb0] sm:$0xff]  ;;  %v244_v3 = vld [vmem:[#allocation8 + $0xb8] sm:$0xff] }
  0x34   :  { %170 = vmatpush.msra.mxu0 %v143_v20  ;;  %302 = vmatpush.msra.mxu3 %v252_v54  ;;  %v364_v4 = vld [vmem:[#allocation10 + $0xd8] sm:$0xff]  ;;  %v233_v5 = vld [vmem:[#allocation8 + $0x60] sm:$0xff]  ;;  %v230_v9 = vld [vmem:[#allocation8 + $0x48] sm:$0xff] }
  0x35   :  { %211 = vmatpush.msra.mxu1 %v184_v25  ;;  %283 = vmatpush.msra.mxu2 %v248_v48  ;;  %v240_v6 = vld [vmem:[#allocation8 + $0x98] sm:$0xff]  ;;  %v241_v7 = vld [vmem:[#allocation8 + $0xa0] sm:$0xff]  ;;  %v238_v11 = vld [vmem:[#allocation8 + $0x88] sm:$0xff] }
  0x36   :  { %171 = vmatpush.msra.mxu0 %v142_v22  ;;  %303 = vmatpush.msra.mxu3 %v249_v58  ;;  %v361_v8 = vld [vmem:[#allocation10 + $0xc0] sm:$0xff]  ;;  %v358_v12 = vld [vmem:[#allocation10 + $0xa8] sm:$0xff]  ;;  %v588_v13 = vld [vmem:[%s953_s3] ss:$0 sm:$0xff] }
  0x37   :  { %212 = vmatpush.msra.mxu1 %v183_v27  ;;  %284 = vmatpush.msra.mxu2 %v245_v53  ;;  %v237_v10 = vld [vmem:[#allocation8 + $0x80] sm:$0xff]  ;;  %v227_v14 = vld [vmem:[#allocation8 + $0x30] sm:$0xff]  ;;  %v234_v15 = vld [vmem:[#allocation8 + $0x68] sm:$0xff] }
  0x38   :  { %172 = vmatpush.msra.mxu0 %v141_v24  ;;  %304 = vmatpush.msra.mxu3 %v246_v62  ;;  %v235_v16 = vld [vmem:[#allocation8 + $0x70] sm:$0xff]  ;;  %v224_v17 = vld [vmem:[#allocation8 + $0x18] sm:$0xff]  ;;  %v221_v22 = vld [vmem:[#allocation8] sm:$0xff] }
  0x39   :  { %213 = vmatpush.msra.mxu1 %v182_v30  ;;  %285 = vmatpush.msra.mxu2 %v242_v57  ;;  %v231_v18 = vld [vmem:[#allocation8 + $0x50] sm:$0xff]  ;;  %v232_v20 = vld [vmem:[#allocation8 + $0x58] sm:$0xff]  ;;  %v377_v27 = vld [vmem:[#allocation10 + $0x140] sm:$0xff] }
  0x3a   :  { %173 = vmatpush.msra.mxu0 %v140_v26  ;;  %305 = vmatpush.msra.mxu3 %v243_v2  ;;  %v228_v23 = vld [vmem:[#allocation8 + $0x38] sm:$0xff]  ;;  %v383_v24 = vld [vmem:[#allocation10 + $0x170] sm:$0xff]  ;;  %v229_v34 = vld [vmem:[#allocation8 + $0x40] sm:$0xff] }
  0x3b   :  { %214 = vmatpush.msra.mxu1 %v181_v31  ;;  %286 = vmatpush.msra.mxu2 %v239_v61  ;;  %v380_v26 = vld [vmem:[#allocation10 + $0x158] sm:$0xff]  ;;  %v365_v31 = vld [vmem:[#allocation10 + $0xe0] sm:$0xff]  ;;  %v359_v33 = vld [vmem:[#allocation10 + $0xb0] sm:$0xff] }
  0x3c   :  { %174 = vmatpush.msra.mxu0 %v139_v28  ;;  %306 = vmatpush.msra.mxu3 %v240_v6  ;;  %v374_v28 = vld [vmem:[#allocation10 + $0x128] sm:$0xff]  ;;  %v368_v30 = vld [vmem:[#allocation10 + $0xf8] sm:$0xff]  ;;  %v355_v35 = vld [vmem:[#allocation10 + $0x90] sm:$0xff] }
  0x3d   :  { %175 = vmatmul.f32.vlgmr.msra.gmra.mxu0 %v137_v29  ;;  %215 = vmatpush.msra.mxu1 %v180_v32  ;;  %v371_v29 = vld [vmem:[#allocation10 + $0x110] sm:$0xff]  ;;  %v362_v32 = vld [vmem:[#allocation10 + $0xc8] sm:$0xff]  ;;  %v356_v36 = vld [vmem:[#allocation10 + $0x98] sm:$0xff] }
  0x3e   :  { %317 = vmatpush.msrb.mxu0 %v268_v38  ;;  %287 = vmatpush.msra.mxu2 %v236_v1  ;;  %v225_v37 = vld [vmem:[#allocation8 + $0x20] sm:$0xff]  ;;  %v226_v38 = vld [vmem:[#allocation8 + $0x28] sm:$0xff]  ;;  %v352_v39 = vld [vmem:[#allocation10 + $0x78] sm:$0xff] }
  0x3f   :  { %385 = vmatpush.msrb.mxu1 %v382_v46  ;;  %307 = vmatpush.msra.mxu3 %v237_v10  ;;  %v222_v41 = vld [vmem:[#allocation8 + $0x8] sm:$0xff]  ;;  %v223_v42 = vld [vmem:[#allocation8 + $0x10] sm:$0xff]  ;;  %v384_v45 = vld [vmem:[#allocation10 + $0x178] sm:$0xff] }
  0x40   :  { %318 = vmatpush.msrb.mxu0 %v265_v40  ;;  %288 = vmatpush.msra.mxu2 %v233_v5  ;;  %v353_v40 = vld [vmem:[#allocation10 + $0x80] sm:$0xff]  ;;  %v350_v44 = vld [vmem:[#allocation10 + $0x68] sm:$0xff]  ;;  %v343_v49 = vld [vmem:[#allocation10 + $0x30] sm:$0xff] }
  0x41   :  { %386 = vmatpush.msrb.mxu1 %v379_v50  ;;  %308 = vmatpush.msra.mxu3 %v234_v15  ;;  %v346_v46 = vld [vmem:[#allocation10 + $0x48] sm:$0xff]  ;;  %v381_v48 = vld [vmem:[#allocation10 + $0x160] sm:$0xff]  ;;  %v344_v50 = vld [vmem:[#allocation10 + $0x38] sm:$0xff] }
  0x42   :  { %319 = vmatpush.msrb.mxu0 %v262_v43  ;;  %289 = vmatpush.msra.mxu2 %v230_v9  ;;  %v349_v43 = vld [vmem:[#allocation10 + $0x60] sm:$0xff]  ;;  %v375_v54 = vld [vmem:[#allocation10 + $0x130] sm:$0xff]  ;;  %v372_v57 = vld [vmem:[#allocation10 + $0x118] sm:$0xff] }
  0x43   :  { %387 = vmatpush.msrb.mxu1 %v376_v52  ;;  %309 = vmatpush.msra.mxu3 %v231_v18  ;;  %v340_v52 = vld [vmem:[#allocation10 + $0x18] sm:$0xff]  ;;  %v341_v53 = vld [vmem:[#allocation10 + $0x20] sm:$0xff]  ;;  %v363_v61 = vld [vmem:[#allocation10 + $0xd0] sm:$0xff] }
  0x44   :  { %320 = vmatpush.msrb.mxu0 %v259_v47  ;;  %290 = vmatpush.msra.mxu2 %v227_v14  ;;  %v347_v47 = vld [vmem:[#allocation10 + $0x50] sm:$0xff]  ;;  %v921_v58 = vld [vmem:[#allocation2] sm:$0xff]  ;;  %v342_v5 = vld [vmem:[#allocation10 + $0x28] sm:$0xff] }
  0x45   :  { %388 = vmatpush.msrb.mxu1 %v373_v56  ;;  %310 = vmatpush.msra.mxu3 %v228_v23  ;;  %v338_v56 = vld [vmem:[#allocation10 + $0x8] sm:$0xff]  ;;  %v360_v62 = vld [vmem:[#allocation10 + $0xb8] sm:$0xff]  ;;  %v351_v1 = vld [vmem:[#allocation10 + $0x70] sm:$0xff] }
  0x46   :  { %321 = vmatpush.msrb.mxu0 %v256_v51  ;;  %291 = vmatpush.msra.mxu2 %v224_v17  ;;  %v378_v51 = vld [vmem:[#allocation10 + $0x148] sm:$0xff]  ;;  %v348_v2 = vld [vmem:[#allocation10 + $0x58] sm:$0xff]  ;;  %v506_v17 = vld [vmem:[#allocation11 + $0x50] sm:$0xff] }
  0x47   :  { %389 = vmatpush.msrb.mxu1 %v370_v60  ;;  %311 = vmatpush.msra.mxu3 %v225_v37  ;;  %v366_v60 = vld [vmem:[#allocation10 + $0xe8] sm:$0xff]  ;;  %v511_v10 = vld [vmem:[#allocation11 + $0x78] sm:$0xff] }
  0x48   :  { %322 = vmatpush.msrb.mxu0 %v253_v55  ;;  %292 = vmatpush.msra.mxu2 %v221_v22  ;;  %v337_v55 = vld [vmem:[#allocation10] sm:$0xff]  ;;  %v507_v14 = vld [vmem:[#allocation11 + $0x58] sm:$0xff]  ;;  %v505_v18 = vld [vmem:[#allocation11 + $0x48] sm:$0xff] }
  0x49   :  { %390 = vmatpush.msrb.mxu1 %v367_v0  ;;  %312 = vmatpush.msra.mxu3 %v222_v41  ;;  %v354_v0 = vld [vmem:[#allocation10 + $0x88] sm:$0xff]  ;;  %v932_v15 = vld [vmem:[%s958_s8] sm:$0x7]  ;;  %v504_v22 = vld [vmem:[#allocation11 + $0x40] sm:$0xff] }
  0x4a   :  { %323 = vmatpush.msrb.mxu0 %v250_v59  ;;  %405 = vmatpush.msrb.mxu2 %v383_v24  ;;  %v369_v59 = vld [vmem:[#allocation10 + $0x100] sm:$0xff]  ;;  %v272_v23 = vperm.slane %v932_v15, 1 }
  0x4b   :  { %391 = vmatpush.msrb.mxu1 %v364_v4  ;;  %425 = vmatpush.msrb.mxu3 %v384_v45  ;;  %v345_v4 = vld [vmem:[#allocation10 + $0x40] sm:$0xff] }
  0x4c   :  { %324 = vmatpush.msrb.mxu0 %v247_v63  ;;  %406 = vmatpush.msrb.mxu2 %v380_v26  ;;  %v357_v63 = vld [vmem:[#allocation10 + $0xa0] sm:$0xff] }
  0x4d   :  { %392 = vmatpush.msrb.mxu1 %v361_v8  ;;  %426 = vmatpush.msrb.mxu3 %v381_v48  ;;  %v339_v8 = vld [vmem:[#allocation10 + $0x10] sm:$0xff] }
  0x4e   :  { %325 = vmatpush.msrb.mxu0 %v244_v3  ;;  %407 = vmatpush.msrb.mxu2 %v377_v27  ;;  %v589_v3 = vld [vmem:[%s955_s5] ss:$0 sm:$0xff] }
  0x4f   :  { %393 = vmatpush.msrb.mxu1 %v358_v12  ;;  %427 = vmatpush.msrb.mxu3 %v378_v51  ;;  %v509_v12 = vld [vmem:[#allocation11 + $0x68] sm:$0xff] }
  0x50   :  { %326 = vmatpush.msrb.mxu0 %v241_v7  ;;  %408 = vmatpush.msrb.mxu2 %v374_v28  ;;  %v502_v28 = vld [vmem:[#allocation11 + $0x30] sm:$0xff] }
  0x51   :  { %394 = vmatpush.msrb.mxu1 %v355_v35  ;;  %428 = vmatpush.msrb.mxu3 %v375_v54 }
  0x52   :  { %327 = vmatpush.msrb.mxu0 %v238_v11  ;;  %409 = vmatpush.msrb.mxu2 %v371_v29  ;;  %v510_v11 = vld [vmem:[#allocation11 + $0x70] sm:$0xff]  ;;  %v501_v29 = vld [vmem:[#allocation11 + $0x28] sm:$0xff] }
  0x53   :  { %395 = vmatpush.msrb.mxu1 %v352_v39  ;;  %429 = vmatpush.msrb.mxu3 %v372_v57 }
  0x54   :  { %328 = vmatpush.msrb.mxu0 %v235_v16  ;;  %410 = vmatpush.msrb.mxu2 %v368_v30  ;;  %v271_v16 = vperm.slane %v932_v15, 0 }
  0x55   :  { %396 = vmatpush.msrb.mxu1 %v349_v43  ;;  %430 = vmatpush.msrb.mxu3 %v369_v59 }
  0x56   :  { %329 = vmatpush.msrb.mxu0 %v232_v20  ;;  %411 = vmatpush.msrb.mxu2 %v365_v31  ;;  %v500_v31 = vld [vmem:[#allocation11 + $0x20] sm:$0xff] }
  0x57   :  { %397 = vmatpush.msrb.mxu1 %v346_v46  ;;  %431 = vmatpush.msrb.mxu3 %v366_v60  ;;  %v590_v46 = vld [vmem:[%s959_s9] ss:$0 sm:$0xff]  ;;  %s816_s9 = smov [#allocation14]  }
  0x58   :  { %412 = vmatpush.msrb.mxu2 %v362_v32  ;;  %330 = vmatpush.msrb.mxu0 %v229_v34  ;;  %v499_v34 = vld [vmem:[#allocation11 + $0x18] sm:$0xff]  ;;  %s554_s24 = sshll.u32 %s816_s9, 4  ;;  %s555_s24 = int_to_ptr.vmem [resolvable:$true] %s554_s24 }
  0x59   :  { %398 = vmatpush.msrb.mxu1 %v343_v49  ;;  %432 = vmatpush.msrb.mxu3 %v363_v61 }
  0x5a   :  { %413 = vmatpush.msrb.mxu2 %v359_v33  ;;  %331 = vmatpush.msrb.mxu0 %v226_v38  ;;  %v497_v38 = vld [vmem:[#allocation11 + $0x8] sm:$0xff] }
  0x5b   :  { %399 = vmatpush.msrb.mxu1 %v340_v52  ;;  %433 = vmatpush.msrb.mxu3 %v360_v62  ;;  %v273_v52 = vperm.slane %v932_v15, 2 }
  0x5c   :  { %414 = vmatpush.msrb.mxu2 %v356_v36  ;;  %332 = vmatpush.msrb.mxu0 %v223_v42  ;;  %v498_v36 = vld [vmem:[#allocation11 + $0x10] sm:$0xff] }
  0x5d   :  { %400 = vmatpush.msrb.mxu1 %v337_v55  ;;  %434 = vmatpush.msrb.mxu3 %v357_v63 }
  0x5e   :  { %415 = vmatpush.msrb.mxu2 %v353_v40  ;;  %516 = vmatpush.msra.mxu0 %v511_v10  ;;  %v496_v40 = vld [vmem:[#allocation11] sm:$0xff] }
  0x5f   :  { %435 = vmatpush.msrb.mxu3 %v354_v0 }
  0x60   :  { %416 = vmatpush.msrb.mxu2 %v350_v44  ;;  %517 = vmatpush.msra.mxu0 %v510_v11 }
  0x61   :  { %436 = vmatpush.msrb.mxu3 %v351_v1 }
  0x62   :  { %417 = vmatpush.msrb.mxu2 %v347_v47  ;;  %518 = vmatpush.msra.mxu0 %v509_v12  ;;  %v591_v12 = vld [vmem:[%s961_s11] ss:$0 sm:$0xff] }
  0x63   :  { %437 = vmatpush.msrb.mxu3 %v348_v2 }
  0x64   :  { %418 = vmatpush.msrb.mxu2 %v344_v50 }
  0x65   :  { %438 = vmatpush.msrb.mxu3 %v345_v4 }
  0x66   :  { %419 = vmatpush.msrb.mxu2 %v341_v53 }
  0x67   :  { %439 = vmatpush.msrb.mxu3 %v342_v5 }
  0x68   :  { %420 = vmatpush.msrb.mxu2 %v338_v56 }
  0x69   :  { %440 = vmatpush.msrb.mxu3 %v339_v8 }
  0xba   :  { %v176_v19 = vpop.f32.mrf.mxu0 }
  0xbb   :  { %v177_v21 = vadd.f32 %v588_v13, %v176_v19  ;;  %v508_v13 = vld [vmem:[#allocation11 + $0x60] sm:$0xff] }
  0xbc   :  { %519 = vmatpush.msra.mxu0 %v508_v13 }
  0xbd   :  { %v179_v25 = vmax.f32 %v177_v21, 0.0 }
  0xbe   :  { %520 = vmatpush.msra.mxu0 %v507_v14 }
  0xbf   :  { %216 = vmatmul.f32.vlgmr.msra.gmra.mxu1 %v179_v25  ;;  %v503_v25 = vld [vmem:[#allocation11 + $0x38] sm:$0xff] }
  0xc0   :  { %521 = vmatpush.msra.mxu0 %v506_v17 }
  0xc2   :  { %522 = vmatpush.msra.mxu0 %v505_v18 }
  0xc4   :  { %523 = vmatpush.msra.mxu0 %v504_v22 }
  0xc6   :  { %524 = vmatpush.msra.mxu0 %v503_v25 }
  0xc7   :  { %401 = vmatmul.f32.vlgmr.msrb.gmra.mxu1 %v921_v58 }
  0xc8   :  { %525 = vmatpush.msra.mxu0 %v502_v28 }
  0xca   :  { %526 = vmatpush.msra.mxu0 %v501_v29 }
  0xcc   :  { %527 = vmatpush.msra.mxu0 %v500_v31 }
  0xce   :  { %528 = vmatpush.msra.mxu0 %v499_v34 }
  0xd0   :  { %529 = vmatpush.msra.mxu0 %v498_v36 }
  0xd2   :  { %530 = vmatpush.msra.mxu0 %v497_v38 }
  0xd4   :  { %531 = vmatpush.msra.mxu0 %v496_v40 }
 0x13c   :  { %v217_v6 = vpop.f32.mrf.mxu1 }
 0x13d   :  { %v218_v7 = vadd.f32 %v589_v3, %v217_v6 }
 0x13f   :  { %v220_v9 = vmax.f32 %v218_v7, 0.0 }
 0x141   :  { %293 = vmatmul.f32.vlgmr.msra.gmra.mxu2 %v220_v9  ;;  %313 = vmatmul.f32.vlgmr.msra.gmra.mxu3 %v220_v9 }
 0x142   :  { %333 = vmatmul.f32.vlgmr.msrb.gmra.mxu0 %v220_v9 }
 0x144   :  { %v402_v20 = vpop.f32.mrf.mxu1 }
 0x149   :  { %421 = vmatmul.f32.vlgmr.msrb.gmra.mxu2 %v921_v58  ;;  %441 = vmatmul.f32.vlgmr.msrb.gmra.mxu3 %v921_v58 }
 0x1bf   :  { %v334_v56 = vpop.f32.mrf.mxu0 }
 0x1c0   :  { %v335_v62 = vadd.f32 %v334_v56, %v273_v52 }
 0x1c4   :  { %v294_v19 = vpop.f32.mrf.mxu2  ;;  %v314_v26 = vpop.f32.mrf.mxu3 }
 0x1c5   :  { %v295_v21 = vadd.f32 %v294_v19, %v271_v16  ;;  %v315_v30 = vadd.f32 %v314_v26, %v272_v23 }
 0x1c7   :  { %v445_v24 = vadd.f32 %v402_v20, %v295_v21 }
 0x1c9   :  { %v574_v27 = vmul.f32 -1.442695, %v445_v24 }
 0x1cb   :  { %592 = vpow2.f32 %v574_v27 }
 0x1cc   :  { %v422_v32 = vpop.f32.mrf.mxu2  ;;  %v442_v47 = vpop.f32.mrf.mxu3 }
 0x1cd   :  { %v446_v33 = vadd.f32 %v422_v32, %v315_v30  ;;  %v489_v55 = vadd.f32 %v590_v46, %v442_v47 }
 0x1cf   :  { %v575_v35 = vmul.f32 -1.442695, %v446_v33 }
 0x1d1   :  { %v593_v37 = vpop.eup %592  ;;  %594 = vpow2.f32 %v575_v35 }
 0x1d2   :  { %v453_v39 = vadd.f32 1.0, %v593_v37 }
 0x1d4   :  { %596 = vrcp.f32 %v453_v39  ;;  %v466_v48 = vand.u32 2147483648, %v453_v39  ;;  %v464_v50 = vand.u32 2147483647, %v453_v39  ;;  %vm460_vm1 = vweird.f32 %v453_v39 }
 0x1d6   :  { %v467_v57 = vor.u32 1.1754944e-38, %v466_v48  ;;  %vm465_vm3 = vcmp.eq.f32.partialorder %v464_v50, 8.507059e+37 }
 0x1d7   :  { %v595_v41 = vpop.eup %594 }
 0x1d8   :  { %v454_v42 = vadd.f32 1.0, %v595_v41 }
 0x1da   :  { %v597_v43 = vpop.eup %596  ;;  %598 = vrcp.f32 %v454_v42  ;;  %v481_v3 = vand.u32 2147483648, %v454_v42  ;;  %vm475_vm5 = vweird.f32 %v454_v42  ;;  %v479_v4 = vand.u32 2147483647, %v454_v42 }
 0x1db   :  { %v456_v44 = vmul.f32 %v597_v43, %v453_v39  ;;  %vm461_vm0 = vweird.f32 %v597_v43 }
 0x1dc   :  { %vm462_vm2 = vmor %vm460_vm1, %vm461_vm0  ;;  %v482_v7 = vor.u32 1.1754944e-38, %v481_v3  ;;  %vm480_vm7 = vcmp.eq.f32.partialorder %v479_v4, 8.507059e+37 }
 0x1dd   :  { %v457_v45 = vsub.f32 1.0, %v456_v44 }
 0x1df   :  { %v458_v49 = vmul.f32 %v597_v43, %v457_v45 }
 0x1e0   :  { %v599_v51 = vpop.eup %598 }
 0x1e1   :  { %v471_v53 = vmul.f32 %v599_v51, %v454_v42  ;;  %v459_v54 = vadd.f32 %v597_v43, %v458_v49  ;;  %vm476_vm4 = vweird.f32 %v599_v51 }
 0x1e2   :  { %vm477_vm6 = vmor %vm475_vm5, %vm476_vm4 }
 0x1e3   :  { %v472_v59 = vsub.f32 1.0, %v471_v53  ;;  %v463_v60 = vsel %vm462_vm2, %v597_v43, %v459_v54 }
 0x1e4   :  { %v468_v61 = vsel %vm465_vm3, %v467_v57, %v463_v60 }
 0x1e5   :  { %v490_v63 = vmul.f32 %v489_v55, %v468_v61  ;;  %v473_v0 = vmul.f32 %v599_v51, %v472_v59 }
 0x1e7   :  { %v491_v1 = vadd.f32 %v490_v63, %v335_v62  ;;  %v474_v2 = vadd.f32 %v599_v51, %v473_v0 }
 0x1e9   :  { %600 = vtanh.f32 %v491_v1  ;;  %v478_v5 = vsel %vm477_vm6, %v599_v51, %v474_v2 }
 0x1ea   :  { %v483_v9 = vsel %vm480_vm7, %v482_v7, %v478_v5 }
 0x1ef   :  { %v601_v6 = vpop.eup %600 }
 0x1f0   :  { %v493_v8 = vsub.f32 %v921_v58, %v601_v6 }
 0x1f2   :  { %v494_v10 = vmul.f32 %v493_v8, %v483_v9 }
 0x1f4   :  { %v495_v11 = vadd.f32 %v601_v6, %v494_v10 }
 0x1f6   :  { %532 = vmatmul.f32.vlgmr.msra.gmra.mxu0 %v495_v11  ;;  %537 = vst [vmem:[#allocation14] sm:$0xff] %v495_v11 }
 0x1f7   :  { %559 = dma.vmem_to_hbm [thread:$0]  %s555_s24, 128, %s557_s26, [#allocation15]  }
 0x273   :  { %v533_v58 = vpop.f32.mrf.mxu0 }
 0x274   :  { %v534_v13 = vadd.f32 %v591_v12, %v533_v58 }
 0x276   :  { %536 = vst [vmem:[#allocation13] sm:$0xff] %v534_v13 }
 0x277   :  { %548 = dma.vmem_to_hbm [thread:$0]  %s544_s30, 128, %s546_s1, [#allocation4]  }
 0x278   :  { %802 = dma.done.wait [#allocation4], 128  }
 0x279   :  { %803 = vsyncadd [#allocation4], 4294967168 }
 0x27a   :  { %804 = dma.done.wait [#allocation15], 128  }
 0x27b   :  { %805 = vsyncadd [#allocation15], 4294967168 }
 0x27c   :  { %568 = vsyncpa [#allocation3], 1 }
 0x27d   :  { %569 = vsyncpa [#allocation6], 1 }
 0x27e   :  { %570 = vsyncpa [#allocation9], 1 }
 0x27f   :  { %571 = vsyncpa [#allocation12], 1 }
 0x280   :  { %572 = vsyncpa [#allocation4], 1 }
 0x281   :  { %573 = vsyncpa [#allocation15], 1 }

</bundles_post_ra>
